<compile_context>
chip_gen: v5e
topology: v5e:2x2
jax: 0.10.0
libtpu: 0.0.40
codegen_flags: <defaults>
</compile_context>

<pallas_src>
import math

import jax
import jax.numpy as jnp
from jax.experimental import pallas as pl
from jax.experimental.pallas import tpu as pltpu

MAX_LENGTH = 20   # decoding horizon, as in the Lab4 reference
SOS_TOKEN = 0
EOS_TOKEN = 1

_LANE = 128
_NEG_INF = -1e30

_VMEM = pl.BlockSpec(memory_space=pltpu.MemorySpace.VMEM)
_SMEM = pl.BlockSpec(memory_space=pltpu.MemorySpace.SMEM)


def _round_up(x, m):
    return ((x + m - 1) // m) * m


# ----------------------------------------------------------------------------
# Fused Pallas kernel (encoder + decoder), specialized on teacher_forcing
# ----------------------------------------------------------------------------
def _make_seq2seq_kernel(teacher_forcing: bool):
    def kernel(in_tok_ref, tgt_tok_ref,
               enc_emb_ref, enc_wi_ref, enc_wh_ref, enc_bi_ref, enc_bh_ref,
               dec_emb_ref, dec_wi_ref, dec_wh_ref, dec_bi_ref, dec_bh_ref,
               dec_wout_ref, dec_bout_ref,
               logp_ref):
        Hp = enc_wh_ref.shape[0]
        Vp = dec_wout_ref.shape[1]
        T_in = in_tok_ref.shape[0]
        T_dec = logp_ref.shape[0]

        lane = jax.lax.broadcasted_iota(jnp.int32, (1, Vp), 1)

        def one_hot(tok):
            return (lane == tok).astype(jnp.float32)

        def embed(x_onehot, emb_ref):
            # exact row gather via one-hot matmul against the resident table
            return jnp.dot(x_onehot, emb_ref[...],
                           preferred_element_type=jnp.float32)

        def gru(x, h, wi_ref, wh_ref, bi_ref, bh_ref):
            gi = jnp.dot(x, wi_ref[...],
                         preferred_element_type=jnp.float32) + bi_ref[...]
            gh = jnp.dot(h, wh_ref[...],
                         preferred_element_type=jnp.float32) + bh_ref[...]
            i_r, i_z, i_n = gi[:, 0:Hp], gi[:, Hp:2 * Hp], gi[:, 2 * Hp:3 * Hp]
            h_r, h_z, h_n = gh[:, 0:Hp], gh[:, Hp:2 * Hp], gh[:, 2 * Hp:3 * Hp]
            r = jax.nn.sigmoid(i_r + h_r)
            z = jax.nn.sigmoid(i_z + h_z)
            n = jnp.tanh(i_n + r * h_n)
            return (1.0 - z) * n + z * h

        # ---------------- encoder: GRU over the input sequence ----------------
        def enc_step(t, h):
            x = embed(one_hot(in_tok_ref[t]), enc_emb_ref)
            return gru(x, h, enc_wi_ref, enc_wh_ref, enc_bi_ref, enc_bh_ref)

        hidden = jax.lax.fori_loop(0, T_in, enc_step,
                                   jnp.zeros((1, Hp), jnp.float32))

        # ---------------- decoder: relu(emb) -> GRU -> Linear -> log_softmax --
        def dec_step(i, carry):
            h, x_onehot = carry
            x = jnp.maximum(embed(x_onehot, dec_emb_ref), 0.0)   # F.relu(embedded)
            h_new = gru(x, h, dec_wi_ref, dec_wh_ref, dec_bi_ref, dec_bh_ref)

            logits = jnp.dot(h_new, dec_wout_ref[...],
                             preferred_element_type=jnp.float32) + dec_bout_ref[...]
            m = jnp.max(logits, axis=-1, keepdims=True)
            lse = jnp.log(jnp.sum(jnp.exp(logits - m), axis=-1, keepdims=True)) + m
            logp_ref[i] = logits - lse

            if teacher_forcing:
                nxt = one_hot(tgt_tok_ref[i])
            else:
                # greedy: first index achieving the max logit (== torch topk(1))
                is_max = logits == m
                idx = jnp.min(jnp.where(is_max, lane, Vp), axis=-1, keepdims=True)
                nxt = (lane == idx).astype(jnp.float32)
            return h_new, nxt

        jax.lax.fori_loop(0, T_dec, dec_step, (hidden, one_hot(SOS_TOKEN)))

    return kernel


# ----------------------------------------------------------------------------
# Forward wrapper (mirrors the PyTorch module's forward semantics)
# ----------------------------------------------------------------------------
def seq2seq_forward(params, input_tokens, target_tokens, use_teacher_forcing):
    V = params["vocab_size"]
    Vp = params["dec_wout"].shape[1]

    if use_teacher_forcing:
        t_dec = min(int(target_tokens.shape[0]), MAX_LENGTH)
        tgt = target_tokens.astype(jnp.int32)
    else:
        t_dec = MAX_LENGTH
        tgt = jnp.zeros((1,), jnp.int32)  # dummy, never read in greedy mode
        # TODO(synk): PyTorch breaks greedy decoding early on EOS (token 1);
        # that data-dependent output length is not expressible with static
        # shapes, so the greedy path always emits MAX_LENGTH steps.

    logp = pl.pallas_call(
        _make_seq2seq_kernel(bool(use_teacher_forcing)),
        out_shape=jax.ShapeDtypeStruct((t_dec, 1, Vp), jnp.float32),
        in_specs=[_SMEM, _SMEM] + [_VMEM] * 12,
        out_specs=_VMEM,
    )(input_tokens.astype(jnp.int32), tgt,
      params["enc_emb"], params["enc_wi"], params["enc_wh"],
      params["enc_bi"], params["enc_bh"],
      params["dec_emb"], params["dec_wi"], params["dec_wh"],
      params["dec_bi"], params["dec_bh"],
      params["dec_wout"], params["dec_bout"])

    # strip vocab padding -> [T, 1, V], matching torch.stack(ret)
    return logp[:, :, :V]


# ----------------------------------------------------------------------------
# Parameters: PyTorch-like uniform(-1/sqrt(H), 1/sqrt(H)), lane-padded
# ----------------------------------------------------------------------------
def init_params(key, vocab, hidden):
    Hp = _round_up(hidden, _LANE)
    Vp = _round_up(vocab, _LANE)
    s = 1.0 / math.sqrt(hidden)
    ks = jax.random.split(key, 12)

    def u(k, shape):
        return jax.random.uniform(k, shape, jnp.float32, -s, s)

    def pad2(x, rows, cols):
        out = jnp.zeros((rows, cols), jnp.float32)
        return out.at[:x.shape[0], :x.shape[1]].set(x)

    def pad_gru_w(w):  # [H, 3H] -> [Hp, 3Hp], each gate block lane-aligned
        out = jnp.zeros((Hp, 3 * Hp), jnp.float32)
        for g in range(3):
            out = out.at[:hidden, g * Hp:g * Hp + hidden].set(
                w[:, g * hidden:(g + 1) * hidden])
        return out

    def pad_gru_b(b):  # [1, 3H] -> [1, 3Hp]
        out = jnp.zeros((1, 3 * Hp), jnp.float32)
        for g in range(3):
            out = out.at[:, g * Hp:g * Hp + hidden].set(
                b[:, g * hidden:(g + 1) * hidden])
        return out

    dec_bout = jnp.full((1, Vp), _NEG_INF, jnp.float32)
    dec_bout = dec_bout.at[:, :vocab].set(u(ks[11], (1, vocab)))

    return {
        "vocab_size": vocab,
        "hidden_size": hidden,
        # encoder: Embedding(vocab, H) + GRU(H, H)
        "enc_emb": pad2(u(ks[0], (vocab, hidden)), Vp, Hp),
        "enc_wi": pad_gru_w(u(ks[1], (hidden, 3 * hidden))),
        "enc_wh": pad_gru_w(u(ks[2], (hidden, 3 * hidden))),
        "enc_bi": pad_gru_b(u(ks[3], (1, 3 * hidden))),
        "enc_bh": pad_gru_b(u(ks[4], (1, 3 * hidden))),
        # decoder: Embedding(vocab, H) + ReLU + GRU(H, H) + Linear(H, vocab) + LogSoftmax
        "dec_emb": pad2(u(ks[5], (vocab, hidden)), Vp, Hp),
        "dec_wi": pad_gru_w(u(ks[6], (hidden, 3 * hidden))),
        "dec_wh": pad_gru_w(u(ks[7], (hidden, 3 * hidden))),
        "dec_bi": pad_gru_b(u(ks[8], (1, 3 * hidden))),
        "dec_bh": pad_gru_b(u(ks[9], (1, 3 * hidden))),
        "dec_wout": pad2(u(ks[10], (hidden, vocab)), Hp, Vp),
        "dec_bout": dec_bout,
    }


# ----------------------------------------------------------------------------
# Demo
# ----------------------------------------------------------------------------
if __name__ == "__main__":
    VOCAB = 32    # e.g. 26 letters + SOS/EOS + padding slots
    HIDDEN = 32
    SEQ_LEN = 8

    key = jax.random.PRNGKey(0)
    kp, ki, kt = jax.random.split(key, 3)

    params = init_params(kp, VOCAB, HIDDEN)
    input_tokens = jax.random.randint(ki, (SEQ_LEN,), 2, VOCAB, dtype=jnp.int32)
    target_tokens = jax.random.randint(kt, (SEQ_LEN,), 2, VOCAB, dtype=jnp.int32)

    # teacher-forcing path
    out_tf = seq2seq_forward(params, input_tokens, target_tokens,
                             use_teacher_forcing=True)
    out_tf = jax.block_until_ready(out_tf)
    assert out_tf.shape == (SEQ_LEN, 1, VOCAB), out_tf.shape
    assert out_tf.dtype == jnp.float32
    assert bool(jnp.all(jnp.abs(jnp.exp(out_tf).sum(axis=-1) - 1.0) < 1e-3))

    # greedy (inference) path
    out_gr = seq2seq_forward(params, input_tokens, None,
                             use_teacher_forcing=False)
    out_gr = jax.block_until_ready(out_gr)
    assert out_gr.shape == (MAX_LENGTH, 1, VOCAB), out_gr.shape
    assert bool(jnp.all(jnp.abs(jnp.exp(out_gr).sum(axis=-1) - 1.0) < 1e-3))

    print("KERNEL_OK")
</pallas_src>

<mosaic_0001>
module attributes {stable_mosaic.version = 11 : i64} {
  func.func @kernel(%arg0: memref<8xi32, #tpu.memory_space<smem>>, %arg1: memref<8xi32, #tpu.memory_space<smem>>, %arg2: memref<128x128xf32, #tpu.memory_space<vmem>>, %arg3: memref<128x384xf32, #tpu.memory_space<vmem>>, %arg4: memref<128x384xf32, #tpu.memory_space<vmem>>, %arg5: memref<1x384xf32, #tpu.memory_space<vmem>>, %arg6: memref<1x384xf32, #tpu.memory_space<vmem>>, %arg7: memref<128x128xf32, #tpu.memory_space<vmem>>, %arg8: memref<128x384xf32, #tpu.memory_space<vmem>>, %arg9: memref<128x384xf32, #tpu.memory_space<vmem>>, %arg10: memref<1x384xf32, #tpu.memory_space<vmem>>, %arg11: memref<1x384xf32, #tpu.memory_space<vmem>>, %arg12: memref<128x128xf32, #tpu.memory_space<vmem>>, %arg13: memref<1x128xf32, #tpu.memory_space<vmem>>, %arg14: memref<8x1x128xf32, #tpu.memory_space<vmem>>) attributes {dimension_semantics = [], scalar_prefetch = 0 : i64, scratch_operands = 0 : i64, tpu.core_type = #tpu.core_type<tc>} {
    %0 = tpu.iota {dimensions = array<i32: 1>} : vector<1x128xi32>
    %cst = arith.constant 0.000000e+00 : f32
    %1 = vector.broadcast %cst : f32 to vector<1x128xf32>
    %c0_i32 = arith.constant 0 : i32
    %c8_i32 = arith.constant 8 : i32
    %2 = arith.addi %c0_i32, %c8_i32 : i32
    %c1_i32 = arith.constant 1 : i32
    %3 = scf.for %arg15 = %c0_i32 to %2 step %c1_i32 iter_args(%arg16 = %1) -> (vector<1x128xf32>)  : i32 {
      %10 = arith.index_cast %arg15 : i32 to index
      %11 = memref.load %arg0[%10] : memref<8xi32, #tpu.memory_space<smem>>
      %12 = vector.broadcast %11 : i32 to vector<1x128xi32>
      %13 = arith.cmpi eq, %0, %12 : vector<1x128xi32>
      %14 = arith.extui %13 : vector<1x128xi1> to vector<1x128xi32>
      %15 = arith.sitofp %14 : vector<1x128xi32> to vector<1x128xf32>
      %c0 = arith.constant 0 : index
      %c0_6 = arith.constant 0 : index
      %16 = vector.load %arg2[%c0, %c0_6] : memref<128x128xf32, #tpu.memory_space<vmem>>, vector<128x128xf32>
      %cst_7 = arith.constant dense<0.000000e+00> : vector<1x128xf32>
      %17 = tpu.matmul %15, %16, %cst_7 {dimension_numbers = #tpu.dot_dimension_numbers<[1], [0], [0], [1], [0, 0, 1, 1], [], []>} : vector<1x128xf32>, vector<128x128xf32>, vector<1x128xf32> -> vector<1x128xf32>
      %c0_8 = arith.constant 0 : index
      %c0_9 = arith.constant 0 : index
      %18 = vector.load %arg3[%c0_8, %c0_9] : memref<128x384xf32, #tpu.memory_space<vmem>>, vector<128x384xf32>
      %cst_10 = arith.constant dense<0.000000e+00> : vector<1x384xf32>
      %19 = tpu.matmul %17, %18, %cst_10 {dimension_numbers = #tpu.dot_dimension_numbers<[1], [0], [0], [1], [0, 0, 1, 1], [], []>} : vector<1x128xf32>, vector<128x384xf32>, vector<1x384xf32> -> vector<1x384xf32>
      %c0_11 = arith.constant 0 : index
      %c0_12 = arith.constant 0 : index
      %20 = vector.load %arg5[%c0_11, %c0_12] : memref<1x384xf32, #tpu.memory_space<vmem>>, vector<1x384xf32>
      %21 = arith.addf %19, %20 : vector<1x384xf32>
      %c0_13 = arith.constant 0 : index
      %c0_14 = arith.constant 0 : index
      %22 = vector.load %arg4[%c0_13, %c0_14] : memref<128x384xf32, #tpu.memory_space<vmem>>, vector<128x384xf32>
      %cst_15 = arith.constant dense<0.000000e+00> : vector<1x384xf32>
      %23 = tpu.matmul %arg16, %22, %cst_15 {dimension_numbers = #tpu.dot_dimension_numbers<[1], [0], [0], [1], [0, 0, 1, 1], [], []>} : vector<1x128xf32>, vector<128x384xf32>, vector<1x384xf32> -> vector<1x384xf32>
      %c0_16 = arith.constant 0 : index
      %c0_17 = arith.constant 0 : index
      %24 = vector.load %arg6[%c0_16, %c0_17] : memref<1x384xf32, #tpu.memory_space<vmem>>, vector<1x384xf32>
      %25 = arith.addf %23, %24 : vector<1x384xf32>
      %26 = vector.extract_strided_slice %21 {offsets = [0, 0], sizes = [1, 128], strides = [1, 1]} : vector<1x384xf32> to vector<1x128xf32>
      %27 = vector.extract_strided_slice %21 {offsets = [0, 128], sizes = [1, 128], strides = [1, 1]} : vector<1x384xf32> to vector<1x128xf32>
      %28 = vector.extract_strided_slice %21 {offsets = [0, 256], sizes = [1, 128], strides = [1, 1]} : vector<1x384xf32> to vector<1x128xf32>
      %29 = vector.extract_strided_slice %25 {offsets = [0, 0], sizes = [1, 128], strides = [1, 1]} : vector<1x384xf32> to vector<1x128xf32>
      %30 = vector.extract_strided_slice %25 {offsets = [0, 128], sizes = [1, 128], strides = [1, 1]} : vector<1x384xf32> to vector<1x128xf32>
      %31 = vector.extract_strided_slice %25 {offsets = [0, 256], sizes = [1, 128], strides = [1, 1]} : vector<1x384xf32> to vector<1x128xf32>
      %32 = arith.addf %26, %29 : vector<1x128xf32>
      %33 = arith.negf %32 : vector<1x128xf32>
      %34 = math.exp %33 : vector<1x128xf32>
      %cst_18 = arith.constant 1.000000e+00 : f32
      %35 = vector.broadcast %cst_18 : f32 to vector<1x128xf32>
      %36 = arith.addf %35, %34 : vector<1x128xf32>
      %37 = arith.divf %35, %36 : vector<1x128xf32>
      %38 = arith.addf %27, %30 : vector<1x128xf32>
      %39 = arith.negf %38 : vector<1x128xf32>
      %40 = math.exp %39 : vector<1x128xf32>
      %cst_19 = arith.constant 1.000000e+00 : f32
      %41 = vector.broadcast %cst_19 : f32 to vector<1x128xf32>
      %42 = arith.addf %41, %40 : vector<1x128xf32>
      %43 = arith.divf %41, %42 : vector<1x128xf32>
      %44 = arith.mulf %37, %31 : vector<1x128xf32>
      %45 = arith.addf %28, %44 : vector<1x128xf32>
      %46 = math.tanh %45 : vector<1x128xf32>
      %cst_20 = arith.constant 1.000000e+00 : f32
      %47 = vector.broadcast %cst_20 : f32 to vector<1x128xf32>
      %48 = arith.subf %47, %43 : vector<1x128xf32>
      %49 = arith.mulf %48, %46 : vector<1x128xf32>
      %50 = arith.mulf %43, %arg16 : vector<1x128xf32>
      %51 = arith.addf %49, %50 : vector<1x128xf32>
      scf.yield %51 : vector<1x128xf32>
    }
    %c8_i32_0 = arith.constant 8 : i32
    %c0_i32_1 = arith.constant 0 : i32
    %4 = vector.broadcast %c0_i32_1 : i32 to vector<1x128xi32>
    %5 = arith.cmpi eq, %0, %4 : vector<1x128xi32>
    %6 = arith.extui %5 : vector<1x128xi1> to vector<1x128xi32>
    %7 = arith.sitofp %6 : vector<1x128xi32> to vector<1x128xf32>
    %c0_i32_2 = arith.constant 0 : i32
    %c8_i32_3 = arith.constant 8 : i32
    %8 = arith.addi %c0_i32_2, %c8_i32_3 : i32
    %c1_i32_4 = arith.constant 1 : i32
    %9:2 = scf.for %arg15 = %c0_i32_2 to %8 step %c1_i32_4 iter_args(%arg16 = %3, %arg17 = %7) -> (vector<1x128xf32>, vector<1x128xf32>)  : i32 {
      %c0 = arith.constant 0 : index
      %c0_6 = arith.constant 0 : index
      %10 = vector.load %arg7[%c0, %c0_6] : memref<128x128xf32, #tpu.memory_space<vmem>>, vector<128x128xf32>
      %cst_7 = arith.constant dense<0.000000e+00> : vector<1x128xf32>
      %11 = tpu.matmul %arg17, %10, %cst_7 {dimension_numbers = #tpu.dot_dimension_numbers<[1], [0], [0], [1], [0, 0, 1, 1], [], []>} : vector<1x128xf32>, vector<128x128xf32>, vector<1x128xf32> -> vector<1x128xf32>
      %cst_8 = arith.constant 0.000000e+00 : f32
      %12 = vector.broadcast %cst_8 : f32 to vector<1x128xf32>
      %13 = arith.maximumf %11, %12 : vector<1x128xf32>
      %c0_9 = arith.constant 0 : index
      %c0_10 = arith.constant 0 : index
      %14 = vector.load %arg8[%c0_9, %c0_10] : memref<128x384xf32, #tpu.memory_space<vmem>>, vector<128x384xf32>
      %cst_11 = arith.constant dense<0.000000e+00> : vector<1x384xf32>
      %15 = tpu.matmul %13, %14, %cst_11 {dimension_numbers = #tpu.dot_dimension_numbers<[1], [0], [0], [1], [0, 0, 1, 1], [], []>} : vector<1x128xf32>, vector<128x384xf32>, vector<1x384xf32> -> vector<1x384xf32>
      %c0_12 = arith.constant 0 : index
      %c0_13 = arith.constant 0 : index
      %16 = vector.load %arg10[%c0_12, %c0_13] : memref<1x384xf32, #tpu.memory_space<vmem>>, vector<1x384xf32>
      %17 = arith.addf %15, %16 : vector<1x384xf32>
      %c0_14 = arith.constant 0 : index
      %c0_15 = arith.constant 0 : index
      %18 = vector.load %arg9[%c0_14, %c0_15] : memref<128x384xf32, #tpu.memory_space<vmem>>, vector<128x384xf32>
      %cst_16 = arith.constant dense<0.000000e+00> : vector<1x384xf32>
      %19 = tpu.matmul %arg16, %18, %cst_16 {dimension_numbers = #tpu.dot_dimension_numbers<[1], [0], [0], [1], [0, 0, 1, 1], [], []>} : vector<1x128xf32>, vector<128x384xf32>, vector<1x384xf32> -> vector<1x384xf32>
      %c0_17 = arith.constant 0 : index
      %c0_18 = arith.constant 0 : index
      %20 = vector.load %arg11[%c0_17, %c0_18] : memref<1x384xf32, #tpu.memory_space<vmem>>, vector<1x384xf32>
      %21 = arith.addf %19, %20 : vector<1x384xf32>
      %22 = vector.extract_strided_slice %17 {offsets = [0, 0], sizes = [1, 128], strides = [1, 1]} : vector<1x384xf32> to vector<1x128xf32>
      %23 = vector.extract_strided_slice %17 {offsets = [0, 128], sizes = [1, 128], strides = [1, 1]} : vector<1x384xf32> to vector<1x128xf32>
      %24 = vector.extract_strided_slice %17 {offsets = [0, 256], sizes = [1, 128], strides = [1, 1]} : vector<1x384xf32> to vector<1x128xf32>
      %25 = vector.extract_strided_slice %21 {offsets = [0, 0], sizes = [1, 128], strides = [1, 1]} : vector<1x384xf32> to vector<1x128xf32>
      %26 = vector.extract_strided_slice %21 {offsets = [0, 128], sizes = [1, 128], strides = [1, 1]} : vector<1x384xf32> to vector<1x128xf32>
      %27 = vector.extract_strided_slice %21 {offsets = [0, 256], sizes = [1, 128], strides = [1, 1]} : vector<1x384xf32> to vector<1x128xf32>
      %28 = arith.addf %22, %25 : vector<1x128xf32>
      %29 = arith.negf %28 : vector<1x128xf32>
      %30 = math.exp %29 : vector<1x128xf32>
      %cst_19 = arith.constant 1.000000e+00 : f32
      %31 = vector.broadcast %cst_19 : f32 to vector<1x128xf32>
      %32 = arith.addf %31, %30 : vector<1x128xf32>
      %33 = arith.divf %31, %32 : vector<1x128xf32>
      %34 = arith.addf %23, %26 : vector<1x128xf32>
      %35 = arith.negf %34 : vector<1x128xf32>
      %36 = math.exp %35 : vector<1x128xf32>
      %cst_20 = arith.constant 1.000000e+00 : f32
      %37 = vector.broadcast %cst_20 : f32 to vector<1x128xf32>
      %38 = arith.addf %37, %36 : vector<1x128xf32>
      %39 = arith.divf %37, %38 : vector<1x128xf32>
      %40 = arith.mulf %33, %27 : vector<1x128xf32>
      %41 = arith.addf %24, %40 : vector<1x128xf32>
      %42 = math.tanh %41 : vector<1x128xf32>
      %cst_21 = arith.constant 1.000000e+00 : f32
      %43 = vector.broadcast %cst_21 : f32 to vector<1x128xf32>
      %44 = arith.subf %43, %39 : vector<1x128xf32>
      %45 = arith.mulf %44, %42 : vector<1x128xf32>
      %46 = arith.mulf %39, %arg16 : vector<1x128xf32>
      %47 = arith.addf %45, %46 : vector<1x128xf32>
      %c0_22 = arith.constant 0 : index
      %c0_23 = arith.constant 0 : index
      %48 = vector.load %arg12[%c0_22, %c0_23] : memref<128x128xf32, #tpu.memory_space<vmem>>, vector<128x128xf32>
      %cst_24 = arith.constant dense<0.000000e+00> : vector<1x128xf32>
      %49 = tpu.matmul %47, %48, %cst_24 {dimension_numbers = #tpu.dot_dimension_numbers<[1], [0], [0], [1], [0, 0, 1, 1], [], []>} : vector<1x128xf32>, vector<128x128xf32>, vector<1x128xf32> -> vector<1x128xf32>
      %c0_25 = arith.constant 0 : index
      %c0_26 = arith.constant 0 : index
      %50 = vector.load %arg13[%c0_25, %c0_26] : memref<1x128xf32, #tpu.memory_space<vmem>>, vector<1x128xf32>
      %51 = arith.addf %49, %50 : vector<1x128xf32>
      %cst_27 = arith.constant dense<0xFF800000> : vector<1xf32>
      %52 = vector.multi_reduction <maximumf>, %51, %cst_27 [1] : vector<1x128xf32> to vector<1xf32>
      %53 = vector.shape_cast %52 : vector<1xf32> to vector<1x1xf32>
      %54 = vector.broadcast %53 : vector<1x1xf32> to vector<1x128xf32>
      %55 = arith.subf %51, %54 : vector<1x128xf32>
      %56 = math.exp %55 : vector<1x128xf32>
      %cst_28 = arith.constant dense<0.000000e+00> : vector<1xf32>
      %57 = vector.multi_reduction <add>, %56, %cst_28 [1] : vector<1x128xf32> to vector<1xf32>
      %58 = vector.shape_cast %57 : vector<1xf32> to vector<1x1xf32>
      %59 = math.log %58 : vector<1x1xf32>
      %60 = arith.addf %59, %53 : vector<1x1xf32>
      %61 = vector.broadcast %60 : vector<1x1xf32> to vector<1x128xf32>
      %62 = arith.subf %51, %61 : vector<1x128xf32>
      %63 = arith.index_cast %arg15 : i32 to index
      %c0_29 = arith.constant 0 : index
      %c0_30 = arith.constant 0 : index
      %64 = vector.load %arg14[%63, %c0_29, %c0_30] : memref<8x1x128xf32, #tpu.memory_space<vmem>>, vector<1x1x128xf32>
      %65 = vector.shape_cast %64 : vector<1x1x128xf32> to vector<1x128xf32>
      %66 = vector.shape_cast %62 : vector<1x128xf32> to vector<1x1x128xf32>
      tpu.vector_store %arg14[%63, %c0_29, %c0_30], %66 {strides = array<i32>} : memref<8x1x128xf32, #tpu.memory_space<vmem>>, vector<1x1x128xf32>,
      %67 = arith.index_cast %arg15 : i32 to index
      %68 = memref.load %arg1[%67] : memref<8xi32, #tpu.memory_space<smem>>
      %69 = vector.broadcast %68 : i32 to vector<1x128xi32>
      %70 = arith.cmpi eq, %0, %69 : vector<1x128xi32>
      %71 = arith.extui %70 : vector<1x128xi1> to vector<1x128xi32>
      %72 = arith.sitofp %71 : vector<1x128xi32> to vector<1x128xf32>
      scf.yield %47, %72 : vector<1x128xf32>, vector<1x128xf32>
    }
    %c8_i32_5 = arith.constant 8 : i32
    return
  }
}

</mosaic_0001>

<bundles_post_ra>
// kernel: tpu_custom_call.1
= control target key start
LH: loop header
LB: loop body
LE: loop exit
PB: predicated region body
PF: predicated region fallthrough
CT: control target
= control target key end

     0   :  { %19 = vsyncpa [#allocation5], 0  ;;  %s1557_s0 = inlined_call_operand.hbm [shape: s32[8], index: 0, kind: input, shape index: {}]   ;;  %s1558_s1 = inlined_call_operand.hbm [shape: s32[8], index: 1, kind: input, shape index: {}]   ;;  %s1559_s2 = inlined_call_operand.hbm [shape: f32[128,128], index: 2, kind: input, shape index: {}]   ;;  %s1560_s3 = inlined_call_operand.hbm [shape: f32[128,384], index: 3, kind: input, shape index: {}]   ;;  %s1561_s4 = inlined_call_operand.hbm [shape: f32[128,384], index: 4, kind: input, shape index: {}]   ;;  %s1562_s5 = inlined_call_operand.vmem [shape: f32[1,384], index: 5, kind: input, shape index: {}]   ;;  %s1563_s6 = inlined_call_operand.hbm [shape: f32[1,384], index: 6, kind: input, shape index: {}]   ;;  %s1564_s7 = inlined_call_operand.hbm [shape: f32[128,128], index: 7, kind: input, shape index: {}]   ;;  %s1565_s8 = inlined_call_operand.hbm [shape: f32[128,384], index: 8, kind: input, shape index: {}]   ;;  %s1566_s9 = inlined_call_operand.hbm [shape: f32[128,384], index: 9, kind: input, shape index: {}]   ;;  %s1567_s10 = inlined_call_operand.vmem [shape: f32[1,384], index: 10, kind: input, shape index: {}]   ;;  %s1568_s11 = inlined_call_operand.vmem [shape: f32[1,384], index: 11, kind: input, shape index: {}]   ;;  %s1569_s12 = inlined_call_operand.hbm [shape: f32[128,128], index: 12, kind: input, shape index: {}]   ;;  %s1570_s13 = inlined_call_operand.vmem [shape: f32[1,128], index: 13, kind: input, shape index: {}]   ;;  %s1571_s14 = inlined_call_operand.hbm [shape: f32[8,1,128], index: 14, kind: output, shape index: {}]  }
   0x1   :  { %20 = vsyncpa [#allocation7], 0 }
   0x2   :  { %21 = vsyncpa [#allocation3], 0 }
   0x3   :  { %22 = vsyncpa [#allocation10], 0 }
   0x4   :  { %23 = vsyncpa [#allocation13], 0 }
   0x5   :  { %24 = vsyncpa [#allocation16], 0 }
   0x6   :  { %25 = vsyncpa [#allocation19], 0  ;;  %s62_s15 = sshll.u32 %s1560_s3, 4  ;;  %s63_s15 = int_to_ptr.hbm [resolvable:$true] %s62_s15 }
   0x7   :  { %26 = vsyncpa [#allocation4], 0  ;;  %s1343_s16 = smov [#allocation9]   ;;  %s91_s20 = sshll.u32 %s1563_s6, 4  ;;  %s92_s20 = int_to_ptr.hbm [resolvable:$true] %s91_s20 }
   0x8   :  { %s64_s17 = sshll.u32 %s1343_s16, 4  ;;  %s1344_s21 = smov 384   ;;  %s65_s17 = int_to_ptr.vmem [resolvable:$true] %s64_s17 }
   0x9   :  { %s1345_s22 = smov 24   ;;  %s1346_s23 = smov [#allocation12]  }
   0xa   :  { %70 = dma.hbm_to_vmem [thread:$0]  %s63_s15, 6144, %s65_s17, [#allocation10], %s1344_s21, %s1344_s21, %s1345_s22  }
   0xb   :  { %s93_s24 = sshll.u32 %s1346_s23, 4  ;;  %s114_s26 = sshll.u32 %s1565_s8, 4  ;;  %s94_s24 = int_to_ptr.vmem [resolvable:$true] %s93_s24  ;;  %s115_s26 = int_to_ptr.hbm [resolvable:$true] %s114_s26 }
   0xc   :  { %96 = dma.hbm_to_vmem [thread:$0]  %s92_s20, 48, %s94_s24, [#allocation13]  }
   0xd   :  { %s32_s6 = sshll.u32 %s1557_s0, 4  ;;  %s1347_s29 = smov [#allocation15]   ;;  %s33_s6 = int_to_ptr.hbm [resolvable:$true] %s32_s6 }
   0xe   :  { %s116_s30 = sshll.u32 %s1347_s29, 4  ;;  %s1348_s15 = smov [#allocation2]   ;;  %s117_s30 = int_to_ptr.vmem [resolvable:$true] %s116_s30 }
   0xf   :  { %122 = dma.hbm_to_vmem [thread:$0]  %s115_s26, 6144, %s117_s30, [#allocation16], %s1344_s21, %s1344_s21, %s1345_s22  }
  0x10   :  { %35 = dma.hbm_to_smem %s33_s6, 16, %s1348_s15, [#allocation5]  }
  0x11   :  { %s41_s8 = sshll.u32 %s1558_s1, 4  ;;  %s49_s20 = sshll.u32 %s1559_s2, 4  ;;  %s42_s8 = int_to_ptr.hbm [resolvable:$true] %s41_s8  ;;  %s50_s20 = int_to_ptr.hbm [resolvable:$true] %s49_s20 }
  0x12   :  { %s1349_s0 = smov [#allocation6]   ;;  %s1350_s23 = smov [#allocation8]  }
  0x13   :  { %44 = dma.hbm_to_smem %s42_s8, 16, %s1349_s0, [#allocation7]  }
  0x14   :  { %s51_s24 = sshll.u32 %s1350_s23, 4  ;;  %s1351_s25 = smov 128   ;;  %s52_s24 = int_to_ptr.vmem [resolvable:$true] %s51_s24 }
  0x15   :  { %s1352_s3 = smov 8   ;;  %s75_s28 = sshll.u32 %s1561_s4, 4  ;;  %s76_s28 = int_to_ptr.hbm [resolvable:$true] %s75_s28 }
  0x16   :  { %57 = dma.hbm_to_vmem [thread:$0]  %s50_s20, 2048, %s52_s24, [#allocation3], %s1351_s25, %s1351_s25, %s1352_s3  }
  0x17   :  { %s1353_s1 = smov [#allocation11]   ;;  %s101_s2 = sshll.u32 %s1564_s7, 4  ;;  %s102_s2 = int_to_ptr.hbm [resolvable:$true] %s101_s2 }
  0x18   :  { %s77_s6 = sshll.u32 %s1353_s1, 4  ;;  %s1354_s15 = smov [#allocation14]   ;;  %s78_s6 = int_to_ptr.vmem [resolvable:$true] %s77_s6 }
  0x19   :  { %83 = dma.hbm_to_vmem [thread:$0]  %s76_s28, 6144, %s78_s6, [#allocation10], %s1344_s21, %s1344_s21, %s1345_s22  }
  0x1a   :  { %s103_s16 = sshll.u32 %s1354_s15, 4  ;;  %s127_s18 = sshll.u32 %s1566_s9, 4  ;;  %s104_s16 = int_to_ptr.vmem [resolvable:$true] %s103_s16  ;;  %s128_s18 = int_to_ptr.hbm [resolvable:$true] %s127_s18 }
  0x1b   :  { %109 = dma.hbm_to_vmem [thread:$0]  %s102_s2, 2048, %s104_s16, [#allocation13], %s1351_s25, %s1351_s25, %s1352_s3  }
  0x1c   :  { %s144_s20 = sshll.u32 %s1569_s12, 4  ;;  %s1355_s0 = smov [#allocation17]   ;;  %s145_s20 = int_to_ptr.hbm [resolvable:$true] %s144_s20 }
  0x1d   :  { %s129_s7 = sshll.u32 %s1355_s0, 4  ;;  %s1356_s23 = smov [#allocation18]   ;;  %s130_s7 = int_to_ptr.vmem [resolvable:$true] %s129_s7 }
  0x1e   :  { %135 = dma.hbm_to_vmem [thread:$0]  %s128_s18, 6144, %s130_s7, [#allocation16], %s1344_s21, %s1344_s21, %s1345_s22  }
  0x1f   :  { %s146_s24 = sshll.u32 %s1356_s23, 4  ;;  %s147_s24 = int_to_ptr.vmem [resolvable:$true] %s146_s24 }
  0x20   :  { %152 = dma.hbm_to_vmem [thread:$0]  %s145_s20, 2048, %s147_s24, [#allocation19], %s1351_s25, %s1351_s25, %s1352_s3  }
  0x21   :  { %1307 = dma.done.wait [#allocation5], 16  }
  0x22   :  { %1308 = vsyncadd [#allocation5], 4294967280 }
  0x23   :  { %1309 = dma.done.wait [#allocation7], 16  }
  0x24   :  { %1310 = vsyncadd [#allocation7], 4294967280 }
  0x25   :  { %1311 = dma.done.wait [#allocation3], 2048  }
  0x26   :  { %1312 = vsyncadd [#allocation3], 4294965248 }
  0x27   :  { %1313 = dma.done.wait [#allocation10], 12288  }
  0x28   :  { %1314 = vsyncadd [#allocation10], 4294955008 }
  0x29   :  { %1315 = dma.done.wait [#allocation13], 2096  }
  0x2a   :  { %1316 = vsyncadd [#allocation13], 4294965200 }
  0x2b   :  { %1317 = dma.done.wait [#allocation16], 12288  }
  0x2c   :  { %1318 = vsyncadd [#allocation16], 4294955008 }
  0x2d   :  { %1319 = dma.done.wait [#allocation19], 2048  }
  0x2e   :  { %1320 = vsyncadd [#allocation19], 4294965248 }
  0x2f   :  { %195 = sfence }
  0x30   :  { %v196_v0 = vlaneseq  ;;  %v1482_v2 = vmov 0.0   ;;  %s1484_s9 = smov 0  }
  0x32   :  { %v1480_v1 = vand.u32 127, %v196_v0 }
  0x33 LB: > { %v225_v3 = vld [vmem:[#allocation8 + $0x78] sm:$0xff]  ;;  %v224_v4 = vld [vmem:[#allocation8 + $0x70] sm:$0xff]  ;;  %v223_v5 = vld [vmem:[#allocation8 + $0x68] sm:$0xff]  ;;  %s1493_s12 = sld [smem:[#allocation2 + %s1329_s9]]  ;;  %v1357_v60 = vmov 1.0   ;;  %s203_s9 = sadd.s32 1, %s1329_s9   ;;  %s1329_s9 = sphi %s1484_s9, %s203_s9   ;;  %v1325_v2 = vphi %v1482_v2, %v1572_v2  }
  0x34   : > { %226 = vmatpush.msra.mxu0 %v225_v3  ;;  %v222_v6 = vld [vmem:[#allocation8 + $0x60] sm:$0xff]  ;;  %v291_v7 = vld [vmem:[#allocation9 + $0x168] sm:$0xff]  ;;  %v288_v8 = vld [vmem:[#allocation9 + $0x150] sm:$0xff]  ;;  %p200_p0 = scmp.ge.s32.totalorder %s203_s9, 8  }
  0x35   : > { %v221_v9 = vld [vmem:[#allocation8 + $0x58] sm:$0xff]  ;;  %302 = vmatpush.msra.mxu1 %v291_v7  ;;  %v220_v11 = vld [vmem:[#allocation8 + $0x50] sm:$0xff]  ;;  %v282_v13 = vld [vmem:[#allocation9 + $0x120] sm:$0xff]  ;;  %vm525_vm9 = vcmp.eq.s32.totalorder (%p200_p0), %v1480_v1, 0  ;;  %s1514_s25 = smov (%p200_p0), 0  }
  0x36   : > { %227 = vmatpush.msra.mxu0 %v224_v4  ;;  %v285_v10 = vld [vmem:[#allocation9 + $0x138] sm:$0xff]  ;;  %v292_v12 = vld [vmem:[#allocation9 + $0x170] sm:$0xff]  ;;  %v219_v15 = vld [vmem:[#allocation8 + $0x48] sm:$0xff] }
  0x37   : > { %303 = vmatpush.msra.mxu1 %v288_v8  ;;  %322 = vmatpush.msra.mxu2 %v292_v12  ;;  %v289_v14 = vld [vmem:[#allocation9 + $0x158] sm:$0xff]  ;;  %v286_v16 = vld [vmem:[#allocation9 + $0x140] sm:$0xff]  ;;  %v279_v18 = vld [vmem:[#allocation9 + $0x108] sm:$0xff] }
  0x38   : > { %228 = vmatpush.msra.mxu0 %v223_v5  ;;  %v293_v17 = vld [vmem:[#allocation9 + $0x178] sm:$0xff]  ;;  %v218_v19 = vld [vmem:[#allocation8 + $0x40] sm:$0xff]  ;;  %v283_v20 = vld [vmem:[#allocation9 + $0x128] sm:$0xff] }
  0x39   : > { %304 = vmatpush.msra.mxu1 %v285_v10  ;;  %323 = vmatpush.msra.mxu2 %v289_v14  ;;  %v290_v21 = vld [vmem:[#allocation9 + $0x160] sm:$0xff]  ;;  %v276_v22 = vld [vmem:[#allocation9 + $0xf0] sm:$0xff]  ;;  %v287_v23 = vld [vmem:[#allocation9 + $0x148] sm:$0xff]  ;;  %v206_v49 = vstv %s1493_s12 }
  0x3a   : > { %229 = vmatpush.msra.mxu0 %v222_v6  ;;  %342 = vmatpush.msra.mxu3 %v293_v17  ;;  %v217_v24 = vld [vmem:[#allocation8 + $0x38] sm:$0xff]  ;;  %v280_v25 = vld [vmem:[#allocation9 + $0x110] sm:$0xff]  ;;  %v270_v30 = vld [vmem:[#allocation9 + $0xc0] sm:$0xff]  ;;  %vm207_vm0 = vcmp.eq.s32.totalorder %v1480_v1, %v206_v49 }
  0x3b   : > { %305 = vmatpush.msra.mxu1 %v282_v13  ;;  %324 = vmatpush.msra.mxu2 %v286_v16  ;;  %v273_v26 = vld [vmem:[#allocation9 + $0xd8] sm:$0xff]  ;;  %v284_v27 = vld [vmem:[#allocation9 + $0x130] sm:$0xff]  ;;  %v215_v32 = vld [vmem:[#allocation8 + $0x28] sm:$0xff] }
  0x3c   : > { %230 = vmatpush.msra.mxu0 %v221_v9  ;;  %343 = vmatpush.msra.mxu3 %v290_v21  ;;  %v216_v28 = vld [vmem:[#allocation8 + $0x30] sm:$0xff]  ;;  %v277_v29 = vld [vmem:[#allocation9 + $0xf8] sm:$0xff]  ;;  %v274_v33 = vld [vmem:[#allocation9 + $0xe0] sm:$0xff] }
  0x3d   : > { %306 = vmatpush.msra.mxu1 %v279_v18  ;;  %325 = vmatpush.msra.mxu2 %v283_v20  ;;  %v281_v31 = vld [vmem:[#allocation9 + $0x118] sm:$0xff]  ;;  %v267_v34 = vld [vmem:[#allocation9 + $0xa8] sm:$0xff]  ;;  %v278_v35 = vld [vmem:[#allocation9 + $0x100] sm:$0xff] }
  0x3e   : > { %231 = vmatpush.msra.mxu0 %v220_v11  ;;  %344 = vmatpush.msra.mxu3 %v287_v23  ;;  %v214_v36 = vld [vmem:[#allocation8 + $0x20] sm:$0xff]  ;;  %v271_v37 = vld [vmem:[#allocation9 + $0xc8] sm:$0xff]  ;;  %v264_v38 = vld [vmem:[#allocation9 + $0x90] sm:$0xff] }
  0x3f   : > { %307 = vmatpush.msra.mxu1 %v276_v22  ;;  %326 = vmatpush.msra.mxu2 %v280_v25  ;;  %v275_v39 = vld [vmem:[#allocation9 + $0xe8] sm:$0xff]  ;;  %v213_v40 = vld [vmem:[#allocation8 + $0x18] sm:$0xff]  ;;  %v268_v41 = vld [vmem:[#allocation9 + $0xb0] sm:$0xff] }
  0x40   : > { %232 = vmatpush.msra.mxu0 %v219_v15  ;;  %345 = vmatpush.msra.mxu3 %v284_v27  ;;  %v261_v42 = vld [vmem:[#allocation9 + $0x78] sm:$0xff]  ;;  %v272_v43 = vld [vmem:[#allocation9 + $0xd0] sm:$0xff]  ;;  %v258_v46 = vld [vmem:[#allocation9 + $0x60] sm:$0xff] }
  0x41   : > { %308 = vmatpush.msra.mxu1 %v273_v26  ;;  %327 = vmatpush.msra.mxu2 %v277_v29  ;;  %v212_v44 = vld [vmem:[#allocation8 + $0x10] sm:$0xff]  ;;  %v265_v45 = vld [vmem:[#allocation9 + $0x98] sm:$0xff]  ;;  %v211_v48 = vld [vmem:[#allocation8 + $0x8] sm:$0xff] }
  0x42   : > { %233 = vmatpush.msra.mxu0 %v218_v19  ;;  %346 = vmatpush.msra.mxu3 %v281_v31  ;;  %v269_v47 = vld [vmem:[#allocation9 + $0xb8] sm:$0xff]  ;;  %v262_v50 = vld [vmem:[#allocation9 + $0x80] sm:$0xff]  ;;  %v255_v51 = vld [vmem:[#allocation9 + $0x48] sm:$0xff] }
  0x43   : > { %309 = vmatpush.msra.mxu1 %v270_v30  ;;  %328 = vmatpush.msra.mxu2 %v274_v33  ;;  %v266_v52 = vld [vmem:[#allocation9 + $0xa0] sm:$0xff]  ;;  %v259_v54 = vld [vmem:[#allocation9 + $0x68] sm:$0xff]  ;;  %v252_v55 = vld [vmem:[#allocation9 + $0x30] sm:$0xff] }
  0x44   : > { %234 = vmatpush.msra.mxu0 %v217_v24  ;;  %347 = vmatpush.msra.mxu3 %v278_v35  ;;  %v210_v53 = vld [vmem:[#allocation8] sm:$0xff]  ;;  %v407_v56 = vld [vmem:[#allocation11 + $0x168] sm:$0xff]  ;;  %v256_v57 = vld [vmem:[#allocation9 + $0x50] sm:$0xff] }
  0x45   : > { %310 = vmatpush.msra.mxu1 %v267_v34  ;;  %329 = vmatpush.msra.mxu2 %v271_v37  ;;  %v249_v58 = vld [vmem:[#allocation9 + $0x18] sm:$0xff]  ;;  %v263_v59 = vld [vmem:[#allocation9 + $0x88] sm:$0xff]  ;;  %v404_v61 = vld [vmem:[#allocation11 + $0x150] sm:$0xff] }
  0x46   : > { %235 = vmatpush.msra.mxu0 %v216_v28  ;;  %348 = vmatpush.msra.mxu3 %v275_v39  ;;  %v253_v62 = vld [vmem:[#allocation9 + $0x38] sm:$0xff]  ;;  %v246_v63 = vld [vmem:[#allocation9] sm:$0xff]  ;;  %v260_v0 = vld [vmem:[#allocation9 + $0x70] sm:$0xff] }
  0x47   : > { %311 = vmatpush.msra.mxu1 %v264_v38  ;;  %330 = vmatpush.msra.mxu2 %v268_v41  ;;  %v401_v3 = vld [vmem:[#allocation11 + $0x138] sm:$0xff]  ;;  %v408_v4 = vld [vmem:[#allocation11 + $0x170] sm:$0xff]  ;;  %v250_v5 = vld [vmem:[#allocation9 + $0x20] sm:$0xff] }
  0x48   : > { %236 = vmatpush.msra.mxu0 %v215_v32  ;;  %349 = vmatpush.msra.mxu3 %v272_v43  ;;  %v257_v6 = vld [vmem:[#allocation9 + $0x58] sm:$0xff]  ;;  %v398_v7 = vld [vmem:[#allocation11 + $0x120] sm:$0xff]  ;;  %v247_v9 = vld [vmem:[#allocation9 + $0x8] sm:$0xff] }
  0x49   : > { %312 = vmatpush.msra.mxu1 %v261_v42  ;;  %331 = vmatpush.msra.mxu2 %v265_v45  ;;  %v405_v8 = vld [vmem:[#allocation11 + $0x158] sm:$0xff]  ;;  %v254_v10 = vld [vmem:[#allocation9 + $0x40] sm:$0xff]  ;;  %v395_v11 = vld [vmem:[#allocation11 + $0x108] sm:$0xff] }
  0x4a   : > { %237 = vmatpush.msra.mxu0 %v214_v36  ;;  %350 = vmatpush.msra.mxu3 %v269_v47  ;;  %v402_v12 = vld [vmem:[#allocation11 + $0x140] sm:$0xff]  ;;  %v409_v13 = vld [vmem:[#allocation11 + $0x178] sm:$0xff]  ;;  %v251_v14 = vld [vmem:[#allocation9 + $0x28] sm:$0xff] }
  0x4b   : > { %313 = vmatpush.msra.mxu1 %v258_v46  ;;  %332 = vmatpush.msra.mxu2 %v262_v50  ;;  %v392_v15 = vld [vmem:[#allocation11 + $0xf0] sm:$0xff]  ;;  %v399_v16 = vld [vmem:[#allocation11 + $0x128] sm:$0xff]  ;;  %v406_v17 = vld [vmem:[#allocation11 + $0x160] sm:$0xff] }
  0x4c   : > { %238 = vmatpush.msra.mxu0 %v213_v40  ;;  %351 = vmatpush.msra.mxu3 %v266_v52  ;;  %v389_v18 = vld [vmem:[#allocation11 + $0xd8] sm:$0xff]  ;;  %v396_v19 = vld [vmem:[#allocation11 + $0x110] sm:$0xff]  ;;  %v403_v20 = vld [vmem:[#allocation11 + $0x148] sm:$0xff] }
  0x4d   : > { %314 = vmatpush.msra.mxu1 %v255_v51  ;;  %333 = vmatpush.msra.mxu2 %v259_v54  ;;  %v386_v21 = vld [vmem:[#allocation11 + $0xc0] sm:$0xff]  ;;  %v393_v22 = vld [vmem:[#allocation11 + $0xf8] sm:$0xff]  ;;  %v383_v23 = vld [vmem:[#allocation11 + $0xa8] sm:$0xff] }
  0x4e   : > { %239 = vmatpush.msra.mxu0 %v212_v44  ;;  %352 = vmatpush.msra.mxu3 %v263_v59  ;;  %v390_v24 = vld [vmem:[#allocation11 + $0xe0] sm:$0xff]  ;;  %v380_v25 = vld [vmem:[#allocation11 + $0x90] sm:$0xff]  ;;  %v387_v26 = vld [vmem:[#allocation11 + $0xc8] sm:$0xff] }
  0x4f   : > { %315 = vmatpush.msra.mxu1 %v252_v55  ;;  %334 = vmatpush.msra.mxu2 %v256_v57  ;;  %v377_v27 = vld [vmem:[#allocation11 + $0x78] sm:$0xff]  ;;  %v384_v28 = vld [vmem:[#allocation11 + $0xb0] sm:$0xff]  ;;  %v374_v29 = vld [vmem:[#allocation11 + $0x60] sm:$0xff] }
  0x50   : > { %240 = vmatpush.msra.mxu0 %v211_v48  ;;  %353 = vmatpush.msra.mxu3 %v260_v0  ;;  %v381_v30 = vld [vmem:[#allocation11 + $0x98] sm:$0xff]  ;;  %v371_v31 = vld [vmem:[#allocation11 + $0x48] sm:$0xff]  ;;  %v378_v32 = vld [vmem:[#allocation11 + $0x80] sm:$0xff] }
  0x51   : > { %316 = vmatpush.msra.mxu1 %v249_v58  ;;  %335 = vmatpush.msra.mxu2 %v253_v62  ;;  %v368_v33 = vld [vmem:[#allocation11 + $0x30] sm:$0xff]  ;;  %v365_v34 = vld [vmem:[#allocation11 + $0x18] sm:$0xff]  ;;  %v362_v36 = vld [vmem:[#allocation11] sm:$0xff] }
  0x52   : > { %241 = vmatpush.msra.mxu0 %v210_v53  ;;  %354 = vmatpush.msra.mxu3 %v257_v6  ;;  %v248_v35 = vld [vmem:[#allocation9 + $0x10] sm:$0xff]  ;;  %v375_v37 = vld [vmem:[#allocation11 + $0x68] sm:$0xff]  ;;  %v397_v40 = vld [vmem:[#allocation11 + $0x118] sm:$0xff] }
  0x53   : > { %956 = vmatmul.msk.f32.vlgmr.msra.gmra.mxu0 %vm207_vm0, %v1357_v60  ;;  %317 = vmatpush.msra.mxu1 %v246_v63  ;;  %v400_v38 = vld [vmem:[#allocation11 + $0x130] sm:$0xff]  ;;  %v369_v41 = vld [vmem:[#allocation11 + $0x38] sm:$0xff]  ;;  %v394_v42 = vld [vmem:[#allocation11 + $0x100] sm:$0xff] }
  0x54   : > { %418 = vmatpush.msrb.mxu0 %v407_v56  ;;  %336 = vmatpush.msra.mxu2 %v250_v5  ;;  %v372_v39 = vld [vmem:[#allocation11 + $0x50] sm:$0xff]  ;;  %v366_v43 = vld [vmem:[#allocation11 + $0x20] sm:$0xff]  ;;  %v391_v44 = vld [vmem:[#allocation11 + $0xe8] sm:$0xff] }
  0x55   : > { %438 = vmatpush.msrb.mxu1 %v408_v4  ;;  %355 = vmatpush.msra.mxu3 %v254_v10  ;;  %v363_v45 = vld [vmem:[#allocation11 + $0x8] sm:$0xff]  ;;  %v388_v46 = vld [vmem:[#allocation11 + $0xd0] sm:$0xff]  ;;  %v385_v47 = vld [vmem:[#allocation11 + $0xb8] sm:$0xff] }
  0x56   : > { %419 = vmatpush.msrb.mxu0 %v404_v61  ;;  %337 = vmatpush.msra.mxu2 %v247_v9  ;;  %v382_v48 = vld [vmem:[#allocation11 + $0xa0] sm:$0xff]  ;;  %v379_v49 = vld [vmem:[#allocation11 + $0x88] sm:$0xff]  ;;  %v376_v50 = vld [vmem:[#allocation11 + $0x70] sm:$0xff] }
  0x57   : > { %439 = vmatpush.msrb.mxu1 %v405_v8  ;;  %356 = vmatpush.msra.mxu3 %v251_v14  ;;  %v373_v51 = vld [vmem:[#allocation11 + $0x58] sm:$0xff]  ;;  %v370_v52 = vld [vmem:[#allocation11 + $0x40] sm:$0xff]  ;;  %v367_v53 = vld [vmem:[#allocation11 + $0x28] sm:$0xff] }
  0x58   : > { %420 = vmatpush.msrb.mxu0 %v401_v3  ;;  %458 = vmatpush.msrb.mxu2 %v409_v13  ;;  %v364_v54 = vld [vmem:[#allocation11 + $0x10] sm:$0xff]  ;;  %v410_v56 = vld [vmem:[#allocation12] sm:$0x7] }
  0x59   : > { %440 = vmatpush.msrb.mxu1 %v402_v12  ;;  %357 = vmatpush.msra.mxu3 %v248_v35  ;;  %v294_v57 = vld [vmem:[%s1562_s5] sm:$0x7]  ;;  %v412_v58 = vperm.slane %v410_v56, 0  ;;  %v413_v5 = vperm.slane %v410_v56, 1 }
  0x5a   : > { %421 = vmatpush.msrb.mxu0 %v398_v7  ;;  %459 = vmatpush.msrb.mxu2 %v406_v17  ;;  %v296_v60 = vperm.slane %v294_v57, 0  ;;  %v297_v4 = vperm.slane %v294_v57, 1 }
  0x5b   : > { %441 = vmatpush.msrb.mxu1 %v399_v16 }
  0x5c   : > { %422 = vmatpush.msrb.mxu0 %v395_v11  ;;  %460 = vmatpush.msrb.mxu2 %v403_v20 }
  0x5d   : > { %442 = vmatpush.msrb.mxu1 %v396_v19 }
  0x5e   : > { %423 = vmatpush.msrb.mxu0 %v392_v15  ;;  %461 = vmatpush.msrb.mxu2 %v400_v38 }
  0x5f   : > { %443 = vmatpush.msrb.mxu1 %v393_v22 }
  0x60   : > { %424 = vmatpush.msrb.mxu0 %v389_v18  ;;  %462 = vmatpush.msrb.mxu2 %v397_v40  ;;  %v414_v18 = vperm.slane %v410_v56, 2 }
  0x61   : > { %444 = vmatpush.msrb.mxu1 %v390_v24  ;;  %v298_v24 = vperm.slane %v294_v57, 2 }
  0x62   : > { %425 = vmatpush.msrb.mxu0 %v386_v21  ;;  %463 = vmatpush.msrb.mxu2 %v394_v42 }
  0x63   : > { %445 = vmatpush.msrb.mxu1 %v387_v26 }
  0x64   : > { %426 = vmatpush.msrb.mxu0 %v383_v23  ;;  %464 = vmatpush.msrb.mxu2 %v391_v44 }
  0x65   : > { %446 = vmatpush.msrb.mxu1 %v384_v28 }
  0x66   : > { %427 = vmatpush.msrb.mxu0 %v380_v25  ;;  %465 = vmatpush.msrb.mxu2 %v388_v46 }
  0x67   : > { %447 = vmatpush.msrb.mxu1 %v381_v30 }
  0x68   : > { %428 = vmatpush.msrb.mxu0 %v377_v27  ;;  %466 = vmatpush.msrb.mxu2 %v385_v47 }
  0x69   : > { %448 = vmatpush.msrb.mxu1 %v378_v32 }
  0x6a   : > { %429 = vmatpush.msrb.mxu0 %v374_v29  ;;  %467 = vmatpush.msrb.mxu2 %v382_v48 }
  0x6b   : > { %449 = vmatpush.msrb.mxu1 %v375_v37 }
  0x6c   : > { %430 = vmatpush.msrb.mxu0 %v371_v31  ;;  %468 = vmatpush.msrb.mxu2 %v379_v49  ;;  %v1358_v49 = vmov (%p200_p0), 0.0  }
  0x6d   : > { %450 = vmatpush.msrb.mxu1 %v372_v39 }
  0x6e   : > { %431 = vmatpush.msrb.mxu0 %v368_v33  ;;  %469 = vmatpush.msrb.mxu2 %v376_v50  ;;  %v959_v50 = vsel (%p200_p0), %vm525_vm9, 1.0, %v1358_v49  }
  0x6f   : > { %451 = vmatpush.msrb.mxu1 %v369_v41 }
  0x70   : > { %432 = vmatpush.msrb.mxu0 %v365_v34  ;;  %470 = vmatpush.msrb.mxu2 %v373_v51 }
  0x71   : > { %452 = vmatpush.msrb.mxu1 %v366_v43 }
  0x72   : > { %433 = vmatpush.msrb.mxu0 %v362_v36  ;;  %471 = vmatpush.msrb.mxu2 %v370_v52 }
  0x73   : > { %434 = vmatmul.f32.vlgmr.msrb.gmra.mxu0 %v1325_v2  ;;  %453 = vmatpush.msrb.mxu1 %v363_v45 }
  0x74   : > { %472 = vmatpush.msrb.mxu2 %v367_v53 }
  0x76   : > { %473 = vmatpush.msrb.mxu2 %v364_v54 }
  0xd0   : > { %v243_v55 = vpop.f32.mrf.mxu0 }
  0xd1   : > { %318 = vmatmul.f32.vlgmr.msra.gmra.mxu1 %v243_v55  ;;  %338 = vmatmul.f32.vlgmr.msra.gmra.mxu2 %v243_v55 }
  0xd2   : > { %358 = vmatmul.f32.vlgmr.msra.gmra.mxu3 %v243_v55 }
  0xd9   : > { %454 = vmatmul.f32.vlgmr.msrb.gmra.mxu1 %v1325_v2  ;;  %474 = vmatmul.f32.vlgmr.msrb.gmra.mxu2 %v1325_v2 }
  0xf0   : > { %v435_v59 = vpop.f32.mrf.mxu0 }
  0xf1   : > { %v436_v61 = vadd.f32 %v435_v59, %v412_v58 }
 0x14e   : > { %v319_v62 = vpop.f32.mrf.mxu1 }
 0x14f   : > { %v320_v63 = vadd.f32 %v319_v62, %v296_v60 }
 0x151   : > { %v478_v0 = vadd.f32 %v436_v61, %v320_v63 }
 0x153   : > { %v957_v3 = vmul.f32 -1.442695, %v478_v0 }
 0x154   : > { %v339_v6 = vpop.f32.mrf.mxu2 }
 0x155   : > { %1023 = vpow2.f32 %v957_v3  ;;  %v340_v8 = vadd.f32 %v339_v6, %v297_v4  ;;  %v359_v28 = vpop.f32.mrf.mxu3 }
 0x156   : > { %v455_v7 = vpop.f32.mrf.mxu1  ;;  %v360_v33 = vadd.f32 %v359_v28, %v298_v24 }
 0x157   : > { %v456_v9 = vadd.f32 %v455_v7, %v413_v5 }
 0x159   : > { %v498_v10 = vadd.f32 %v456_v9, %v340_v8 }
 0x15b   : > { %v1024_v11 = vpop.eup %1023  ;;  %v958_v12 = vmul.f32 -1.442695, %v498_v10 }
 0x15c   : > { %v482_v13 = vadd.f32 1.0, %v1024_v11  ;;  %v475_v20 = vpop.f32.mrf.mxu2 }
 0x15d   : > { %1025 = vpow2.f32 %v958_v12  ;;  %v476_v25 = vadd.f32 %v475_v20, %v414_v18 }
 0x15e   : > { %1027 = vrcp.f32 %v482_v13  ;;  %v494_v21 = vand.u32 2147483648, %v482_v13  ;;  %v492_v23 = vand.u32 2147483647, %v482_v13  ;;  %vm488_vm2 = vweird.f32 %v482_v13 }
 0x160   : > { %v495_v29 = vor.u32 1.1754944e-38, %v494_v21  ;;  %vm493_vm4 = vcmp.eq.f32.partialorder %v492_v23, 8.507059e+37 }
 0x163   : > { %v1026_v14 = vpop.eup %1025 }
 0x164   : > { %v1028_v15 = vpop.eup %1027  ;;  %v502_v16 = vadd.f32 1.0, %v1026_v14 }
 0x165   : > { %v484_v17 = vmul.f32 %v1028_v15, %v482_v13  ;;  %vm489_vm1 = vweird.f32 %v1028_v15 }
 0x166   : > { %1029 = vrcp.f32 %v502_v16  ;;  %vm490_vm3 = vmor %vm488_vm2, %vm489_vm1  ;;  %v514_v36 = vand.u32 2147483648, %v502_v16  ;;  %v512_v38 = vand.u32 2147483647, %v502_v16  ;;  %vm508_vm6 = vweird.f32 %v502_v16 }
 0x167   : > { %v485_v19 = vsub.f32 1.0, %v484_v17 }
 0x168   : > { %v515_v41 = vor.u32 1.1754944e-38, %v514_v36  ;;  %vm513_vm8 = vcmp.eq.f32.partialorder %v512_v38, 8.507059e+37 }
 0x169   : > { %v486_v22 = vmul.f32 %v1028_v15, %v485_v19 }
 0x16b   : > { %v487_v26 = vadd.f32 %v1028_v15, %v486_v22 }
 0x16c   : > { %v1030_v27 = vpop.eup %1029 }
 0x16d   : > { %v504_v30 = vmul.f32 %v1030_v27, %v502_v16  ;;  %v491_v31 = vsel %vm490_vm3, %v1028_v15, %v487_v26  ;;  %vm509_vm5 = vweird.f32 %v1030_v27 }
 0x16e   : > { %v496_v32 = vsel %vm493_vm4, %v495_v29, %v491_v31  ;;  %vm510_vm7 = vmor %vm508_vm6, %vm509_vm5 }
 0x16f   : > { %v505_v34 = vsub.f32 1.0, %v504_v30  ;;  %v518_v35 = vmul.f32 %v496_v32, %v476_v25 }
 0x171   : > { %v506_v37 = vmul.f32 %v1030_v27, %v505_v34  ;;  %v519_v39 = vadd.f32 %v518_v35, %v360_v33 }
 0x173   : > { %v507_v40 = vadd.f32 %v1030_v27, %v506_v37  ;;  %1031 = vtanh.f32 %v519_v39 }
 0x175   : > { %v511_v42 = vsel %vm510_vm7, %v1030_v27, %v507_v40 }
 0x176   : > { %v516_v43 = vsel %vm513_vm8, %v515_v41, %v511_v42 }
 0x177   : > { %v521_v44 = vsub.f32 1.0, %v516_v43  ;;  %v523_v47 = vmul.f32 %v1325_v2, %v516_v43 }
 0x179   : > { %v1032_v45 = vpop.eup %1031 }
 0x17a   : > { %v522_v46 = vmul.f32 %v1032_v45, %v521_v44  ;;  %202 = sbr.rel (!%p200_p0) target bundleno = 51 (0x33), region = 131 }
 0x17c   : > { %v524_v48 = vadd.f32 %v523_v47, %v522_v46  }
 0x17e   : > { %v1572_v2 = vmov %v524_v48 }
 0x17f LB: > { %v551_v2 = vld [vmem:[#allocation14 + $0x78] sm:$0xff]  ;;  %v550_v51 = vld [vmem:[#allocation14 + $0x70] sm:$0xff]  ;;  %v549_v52 = vld [vmem:[#allocation14 + $0x68] sm:$0xff]  ;;  %vm889_vm2 = vcmask 1040384   ;;  %s905_s6 = sld [smem:[#allocation6 + %s1341_s25]]  ;;  %s903_s29 = scalar_lea.vmem [#allocation20], %s1341_s25  ;;  %s1341_s25 = sphi %s1514_s25, %s533_s25   ;;  %v1337_v48 = vphi %v524_v48, %v851_v48   ;;  %v1333_v50 = vphi %v959_v50, %v962_v50  }
 0x180   : > { %552 = vmatpush.msra.mxu0 %v551_v2  ;;  %v548_v53 = vld [vmem:[#allocation14 + $0x60] sm:$0xff]  ;;  %v618_v54 = vld [vmem:[#allocation15 + $0x168] sm:$0xff]  ;;  %v615_v55 = vld [vmem:[#allocation15 + $0x150] sm:$0xff]  ;;  %s533_s25 = sadd.s32 1, %s1341_s25  }
 0x181   : > { %v547_v56 = vld [vmem:[#allocation14 + $0x58] sm:$0xff]  ;;  %629 = vmatpush.msra.mxu1 %v618_v54  ;;  %v546_v58 = vld [vmem:[#allocation14 + $0x50] sm:$0xff]  ;;  %v609_v60 = vld [vmem:[#allocation15 + $0x120] sm:$0xff]  ;;  %p530_p1 = scmp.ge.s32.totalorder %s533_s25, 8  }
 0x182   : > { %553 = vmatpush.msra.mxu0 %v550_v51  ;;  %v612_v57 = vld [vmem:[#allocation15 + $0x138] sm:$0xff]  ;;  %v619_v59 = vld [vmem:[#allocation15 + $0x170] sm:$0xff]  ;;  %v545_v62 = vld [vmem:[#allocation14 + $0x48] sm:$0xff]  ;;  %s916_s15 = sshll.u32 (%p530_p1), %s1571_s14, 4  ;;  %s1360_s16 = smov (%p530_p1), [#allocation20]   ;;  %s917_s15 = int_to_ptr.hbm [resolvable:$true] %s916_s15 }
 0x183   : > { %630 = vmatpush.msra.mxu1 %v615_v55  ;;  %649 = vmatpush.msra.mxu2 %v619_v59  ;;  %v616_v61 = vld [vmem:[#allocation15 + $0x158] sm:$0xff]  ;;  %v613_v63 = vld [vmem:[#allocation15 + $0x140] sm:$0xff]  ;;  %v606_v3 = vld [vmem:[#allocation15 + $0x108] sm:$0xff]  ;;  %s914_s17 = sshll.u32 (%p530_p1), %s1360_s16, 4  ;;  %s1361_s8 = smov (%p530_p1), 16   ;;  %s915_s17 = int_to_ptr.vmem [resolvable:$true] %s914_s17 }
 0x184   : > { %554 = vmatpush.msra.mxu0 %v549_v52  ;;  %v620_v0 = vld [vmem:[#allocation15 + $0x178] sm:$0xff]  ;;  %v544_v4 = vld [vmem:[#allocation14 + $0x40] sm:$0xff]  ;;  %v610_v5 = vld [vmem:[#allocation15 + $0x128] sm:$0xff]  ;;  %s1362_s18 = smov (%p530_p1), 1  }
 0x185   : > { %631 = vmatpush.msra.mxu1 %v612_v57  ;;  %650 = vmatpush.msra.mxu2 %v616_v61  ;;  %v617_v6 = vld [vmem:[#allocation15 + $0x160] sm:$0xff]  ;;  %v603_v7 = vld [vmem:[#allocation15 + $0xf0] sm:$0xff]  ;;  %v614_v8 = vld [vmem:[#allocation15 + $0x148] sm:$0xff] }
 0x186   : > { %555 = vmatpush.msra.mxu0 %v548_v53  ;;  %669 = vmatpush.msra.mxu3 %v620_v0  ;;  %v543_v9 = vld [vmem:[#allocation14 + $0x38] sm:$0xff]  ;;  %v607_v10 = vld [vmem:[#allocation15 + $0x110] sm:$0xff]  ;;  %v597_v15 = vld [vmem:[#allocation15 + $0xc0] sm:$0xff] }
 0x187   : > { %632 = vmatpush.msra.mxu1 %v609_v60  ;;  %651 = vmatpush.msra.mxu2 %v613_v63  ;;  %v600_v11 = vld [vmem:[#allocation15 + $0xd8] sm:$0xff]  ;;  %v611_v12 = vld [vmem:[#allocation15 + $0x130] sm:$0xff]  ;;  %v541_v17 = vld [vmem:[#allocation14 + $0x28] sm:$0xff] }
 0x188   : > { %556 = vmatpush.msra.mxu0 %v547_v56  ;;  %670 = vmatpush.msra.mxu3 %v617_v6  ;;  %v542_v13 = vld [vmem:[#allocation14 + $0x30] sm:$0xff]  ;;  %v604_v14 = vld [vmem:[#allocation15 + $0xf8] sm:$0xff]  ;;  %v601_v18 = vld [vmem:[#allocation15 + $0xe0] sm:$0xff] }
 0x189   : > { %633 = vmatpush.msra.mxu1 %v606_v3  ;;  %652 = vmatpush.msra.mxu2 %v610_v5  ;;  %v608_v16 = vld [vmem:[#allocation15 + $0x118] sm:$0xff]  ;;  %v594_v19 = vld [vmem:[#allocation15 + $0xa8] sm:$0xff]  ;;  %v605_v20 = vld [vmem:[#allocation15 + $0x100] sm:$0xff] }
 0x18a   : > { %557 = vmatpush.msra.mxu0 %v546_v58  ;;  %671 = vmatpush.msra.mxu3 %v614_v8  ;;  %v540_v21 = vld [vmem:[#allocation14 + $0x20] sm:$0xff]  ;;  %v598_v22 = vld [vmem:[#allocation15 + $0xc8] sm:$0xff]  ;;  %v591_v23 = vld [vmem:[#allocation15 + $0x90] sm:$0xff] }
 0x18b   : > { %634 = vmatpush.msra.mxu1 %v603_v7  ;;  %653 = vmatpush.msra.mxu2 %v607_v10  ;;  %v602_v24 = vld [vmem:[#allocation15 + $0xe8] sm:$0xff]  ;;  %v539_v25 = vld [vmem:[#allocation14 + $0x18] sm:$0xff]  ;;  %v595_v26 = vld [vmem:[#allocation15 + $0xb0] sm:$0xff] }
 0x18c   : > { %558 = vmatpush.msra.mxu0 %v545_v62  ;;  %672 = vmatpush.msra.mxu3 %v611_v12  ;;  %v588_v27 = vld [vmem:[#allocation15 + $0x78] sm:$0xff]  ;;  %v599_v28 = vld [vmem:[#allocation15 + $0xd0] sm:$0xff]  ;;  %v585_v31 = vld [vmem:[#allocation15 + $0x60] sm:$0xff] }
 0x18d   : > { %635 = vmatpush.msra.mxu1 %v600_v11  ;;  %654 = vmatpush.msra.mxu2 %v604_v14  ;;  %v538_v29 = vld [vmem:[#allocation14 + $0x10] sm:$0xff]  ;;  %v592_v30 = vld [vmem:[#allocation15 + $0x98] sm:$0xff]  ;;  %v537_v33 = vld [vmem:[#allocation14 + $0x8] sm:$0xff] }
 0x18e   : > { %559 = vmatpush.msra.mxu0 %v544_v4  ;;  %673 = vmatpush.msra.mxu3 %v608_v16  ;;  %v596_v32 = vld [vmem:[#allocation15 + $0xb8] sm:$0xff]  ;;  %v589_v34 = vld [vmem:[#allocation15 + $0x80] sm:$0xff]  ;;  %v582_v35 = vld [vmem:[#allocation15 + $0x48] sm:$0xff] }
 0x18f   : > { %636 = vmatpush.msra.mxu1 %v597_v15  ;;  %655 = vmatpush.msra.mxu2 %v601_v18  ;;  %v593_v36 = vld [vmem:[#allocation15 + $0xa0] sm:$0xff]  ;;  %v586_v38 = vld [vmem:[#allocation15 + $0x68] sm:$0xff]  ;;  %v579_v39 = vld [vmem:[#allocation15 + $0x30] sm:$0xff] }
 0x190   : > { %560 = vmatpush.msra.mxu0 %v543_v9  ;;  %674 = vmatpush.msra.mxu3 %v605_v20  ;;  %v536_v37 = vld [vmem:[#allocation14] sm:$0xff]  ;;  %v734_v40 = vld [vmem:[#allocation17 + $0x168] sm:$0xff]  ;;  %v583_v41 = vld [vmem:[#allocation15 + $0x50] sm:$0xff] }
 0x191   : > { %637 = vmatpush.msra.mxu1 %v594_v19  ;;  %656 = vmatpush.msra.mxu2 %v598_v22  ;;  %v576_v42 = vld [vmem:[#allocation15 + $0x18] sm:$0xff]  ;;  %v590_v43 = vld [vmem:[#allocation15 + $0x88] sm:$0xff]  ;;  %v731_v44 = vld [vmem:[#allocation17 + $0x150] sm:$0xff] }
 0x192   : > { %561 = vmatpush.msra.mxu0 %v542_v13  ;;  %675 = vmatpush.msra.mxu3 %v602_v24  ;;  %v580_v45 = vld [vmem:[#allocation15 + $0x38] sm:$0xff]  ;;  %v573_v46 = vld [vmem:[#allocation15] sm:$0xff]  ;;  %v587_v47 = vld [vmem:[#allocation15 + $0x70] sm:$0xff] }
 0x193   : > { %638 = vmatpush.msra.mxu1 %v591_v23  ;;  %657 = vmatpush.msra.mxu2 %v595_v26  ;;  %v728_v49 = vld [vmem:[#allocation17 + $0x138] sm:$0xff]  ;;  %v735_v2 = vld [vmem:[#allocation17 + $0x170] sm:$0xff]  ;;  %v577_v51 = vld [vmem:[#allocation15 + $0x20] sm:$0xff] }
 0x194   : > { %562 = vmatpush.msra.mxu0 %v541_v17  ;;  %676 = vmatpush.msra.mxu3 %v599_v28  ;;  %v584_v52 = vld [vmem:[#allocation15 + $0x58] sm:$0xff]  ;;  %v725_v53 = vld [vmem:[#allocation17 + $0x120] sm:$0xff]  ;;  %v722_v56 = vld [vmem:[#allocation17 + $0x108] sm:$0xff] }
 0x195   : > { %639 = vmatpush.msra.mxu1 %v588_v27  ;;  %658 = vmatpush.msra.mxu2 %v592_v30  ;;  %v732_v54 = vld [vmem:[#allocation17 + $0x158] sm:$0xff]  ;;  %v581_v55 = vld [vmem:[#allocation15 + $0x40] sm:$0xff]  ;;  %v719_v59 = vld [vmem:[#allocation17 + $0xf0] sm:$0xff] }
 0x196   : > { %563 = vmatpush.msra.mxu0 %v540_v21  ;;  %677 = vmatpush.msra.mxu3 %v596_v32  ;;  %v729_v57 = vld [vmem:[#allocation17 + $0x140] sm:$0xff]  ;;  %v736_v58 = vld [vmem:[#allocation17 + $0x178] sm:$0xff]  ;;  %v726_v60 = vld [vmem:[#allocation17 + $0x128] sm:$0xff] }
 0x197   : > { %640 = vmatpush.msra.mxu1 %v585_v31  ;;  %659 = vmatpush.msra.mxu2 %v589_v34  ;;  %v733_v61 = vld [vmem:[#allocation17 + $0x160] sm:$0xff]  ;;  %v716_v62 = vld [vmem:[#allocation17 + $0xd8] sm:$0xff]  ;;  %v723_v63 = vld [vmem:[#allocation17 + $0x110] sm:$0xff] }
 0x198   : > { %564 = vmatpush.msra.mxu0 %v539_v25  ;;  %678 = vmatpush.msra.mxu3 %v593_v36  ;;  %v713_v0 = vld [vmem:[#allocation17 + $0xc0] sm:$0xff]  ;;  %v720_v3 = vld [vmem:[#allocation17 + $0xf8] sm:$0xff]  ;;  %v710_v4 = vld [vmem:[#allocation17 + $0xa8] sm:$0xff] }
 0x199   : > { %641 = vmatpush.msra.mxu1 %v582_v35  ;;  %660 = vmatpush.msra.mxu2 %v586_v38  ;;  %v717_v5 = vld [vmem:[#allocation17 + $0xe0] sm:$0xff]  ;;  %v707_v6 = vld [vmem:[#allocation17 + $0x90] sm:$0xff]  ;;  %v714_v7 = vld [vmem:[#allocation17 + $0xc8] sm:$0xff] }
 0x19a   : > { %565 = vmatpush.msra.mxu0 %v538_v29  ;;  %679 = vmatpush.msra.mxu3 %v590_v43  ;;  %v704_v8 = vld [vmem:[#allocation17 + $0x78] sm:$0xff]  ;;  %v711_v9 = vld [vmem:[#allocation17 + $0xb0] sm:$0xff]  ;;  %v701_v10 = vld [vmem:[#allocation17 + $0x60] sm:$0xff] }
 0x19b   : > { %642 = vmatpush.msra.mxu1 %v579_v39  ;;  %661 = vmatpush.msra.mxu2 %v583_v41  ;;  %v708_v11 = vld [vmem:[#allocation17 + $0x98] sm:$0xff]  ;;  %v698_v12 = vld [vmem:[#allocation17 + $0x48] sm:$0xff]  ;;  %v695_v13 = vld [vmem:[#allocation17 + $0x30] sm:$0xff] }
 0x19c   : > { %566 = vmatpush.msra.mxu0 %v537_v33  ;;  %680 = vmatpush.msra.mxu3 %v587_v47  ;;  %v578_v14 = vld [vmem:[#allocation15 + $0x28] sm:$0xff]  ;;  %v692_v15 = vld [vmem:[#allocation17 + $0x18] sm:$0xff]  ;;  %v705_v16 = vld [vmem:[#allocation17 + $0x80] sm:$0xff] }
 0x19d   : > { %643 = vmatpush.msra.mxu1 %v576_v42  ;;  %662 = vmatpush.msra.mxu2 %v580_v45  ;;  %v730_v17 = vld [vmem:[#allocation17 + $0x148] sm:$0xff]  ;;  %v575_v18 = vld [vmem:[#allocation15 + $0x10] sm:$0xff]  ;;  %v689_v19 = vld [vmem:[#allocation17] sm:$0xff] }
 0x19e   : > { %567 = vmatpush.msra.mxu0 %v536_v37  ;;  %681 = vmatpush.msra.mxu3 %v584_v52  ;;  %v702_v20 = vld [vmem:[#allocation17 + $0x68] sm:$0xff]  ;;  %v727_v21 = vld [vmem:[#allocation17 + $0x130] sm:$0xff]  ;;  %v724_v23 = vld [vmem:[#allocation17 + $0x118] sm:$0xff] }
 0x19f   : > { %568 = vmatmul.f32.vlgmr.msra.gmra.mxu0 %v1333_v50  ;;  %644 = vmatpush.msra.mxu1 %v573_v46  ;;  %v574_v50 = vld [vmem:[#allocation15 + $0x8] sm:$0xff]  ;;  %v699_v22 = vld [vmem:[#allocation17 + $0x50] sm:$0xff]  ;;  %v696_v24 = vld [vmem:[#allocation17 + $0x38] sm:$0xff] }
 0x1a0   : > { %745 = vmatpush.msrb.mxu0 %v734_v40  ;;  %663 = vmatpush.msra.mxu2 %v577_v51  ;;  %v721_v25 = vld [vmem:[#allocation17 + $0x100] sm:$0xff]  ;;  %v718_v27 = vld [vmem:[#allocation17 + $0xe8] sm:$0xff]  ;;  %v715_v29 = vld [vmem:[#allocation17 + $0xd0] sm:$0xff] }
 0x1a1   : > { %765 = vmatpush.msrb.mxu1 %v735_v2  ;;  %682 = vmatpush.msra.mxu3 %v581_v55  ;;  %v693_v26 = vld [vmem:[#allocation17 + $0x20] sm:$0xff]  ;;  %v690_v28 = vld [vmem:[#allocation17 + $0x8] sm:$0xff]  ;;  %v712_v30 = vld [vmem:[#allocation17 + $0xb8] sm:$0xff] }
 0x1a2   : > { %746 = vmatpush.msrb.mxu0 %v731_v44  ;;  %664 = vmatpush.msra.mxu2 %v574_v50  ;;  %v709_v31 = vld [vmem:[#allocation17 + $0xa0] sm:$0xff]  ;;  %v706_v32 = vld [vmem:[#allocation17 + $0x88] sm:$0xff]  ;;  %v703_v33 = vld [vmem:[#allocation17 + $0x70] sm:$0xff] }
 0x1a3   : > { %766 = vmatpush.msrb.mxu1 %v732_v54  ;;  %683 = vmatpush.msra.mxu3 %v578_v14  ;;  %v700_v34 = vld [vmem:[#allocation17 + $0x58] sm:$0xff]  ;;  %v697_v35 = vld [vmem:[#allocation17 + $0x40] sm:$0xff]  ;;  %v694_v36 = vld [vmem:[#allocation17 + $0x28] sm:$0xff] }
 0x1a4   : > { %747 = vmatpush.msrb.mxu0 %v728_v49  ;;  %785 = vmatpush.msrb.mxu2 %v736_v58  ;;  %v691_v37 = vld [vmem:[#allocation17 + $0x10] sm:$0xff]  ;;  %v867_v40 = vld [vmem:[#allocation18 + $0x78] sm:$0xff]  ;;  %v865_v42 = vld [vmem:[#allocation18 + $0x68] sm:$0xff] }
 0x1a5   : > { %767 = vmatpush.msrb.mxu1 %v729_v57  ;;  %684 = vmatpush.msra.mxu3 %v575_v18  ;;  %v866_v41 = vld [vmem:[#allocation18 + $0x70] sm:$0xff]  ;;  %v864_v43 = vld [vmem:[#allocation18 + $0x60] sm:$0xff]  ;;  %v737_v44 = vld [vmem:[%s1568_s11] sm:$0x7] }
 0x1a6   : > { %748 = vmatpush.msrb.mxu0 %v725_v53  ;;  %786 = vmatpush.msrb.mxu2 %v733_v61  ;;  %v863_v45 = vld [vmem:[#allocation18 + $0x58] sm:$0xff]  ;;  %v739_v47 = vperm.slane %v737_v44, 0  ;;  %v862_v49 = vld [vmem:[#allocation18 + $0x50] sm:$0xff]  ;;  %v861_v52 = vld [vmem:[#allocation18 + $0x48] sm:$0xff]  ;;  %v740_v61 = vperm.slane %v737_v44, 1  ;;  %v741_v18 = vperm.slane %v737_v44, 2 }
 0x1a7   : > { %768 = vmatpush.msrb.mxu1 %v726_v60  ;;  %869 = vmatpush.msrb.mxu3 %v867_v40  ;;  %v1535_v46 = vld [vmem:[%s1567_s10] sm:$0x7]  ;;  %v860_v54 = vld [vmem:[#allocation18 + $0x40] sm:$0xff]  ;;  %v858_v58 = vld [vmem:[#allocation18 + $0x30] sm:$0xff] }
 0x1a8   : > { %749 = vmatpush.msrb.mxu0 %v722_v56  ;;  %787 = vmatpush.msrb.mxu2 %v730_v17  ;;  %v623_v51 = vperm.slane %v1535_v46, 0  ;;  %v859_v56 = vld [vmem:[#allocation18 + $0x38] sm:$0xff]  ;;  %v624_v60 = vperm.slane %v1535_v46, 1 }
 0x1a9   : > { %769 = vmatpush.msrb.mxu1 %v723_v63  ;;  %870 = vmatpush.msrb.mxu3 %v866_v41  ;;  %v856_v63 = vld [vmem:[#allocation18 + $0x20] sm:$0xff] }
 0x1aa   : > { %750 = vmatpush.msrb.mxu0 %v719_v59  ;;  %788 = vmatpush.msrb.mxu2 %v727_v21 }
 0x1ab   : > { %770 = vmatpush.msrb.mxu1 %v720_v3  ;;  %871 = vmatpush.msrb.mxu3 %v865_v42  ;;  %v855_v3 = vld [vmem:[#allocation18 + $0x18] sm:$0xff] }
 0x1ac   : > { %751 = vmatpush.msrb.mxu0 %v716_v62  ;;  %789 = vmatpush.msrb.mxu2 %v724_v23  ;;  %v857_v62 = vld [vmem:[#allocation18 + $0x28] sm:$0xff] }
 0x1ad   : > { %771 = vmatpush.msrb.mxu1 %v717_v5  ;;  %872 = vmatpush.msrb.mxu3 %v864_v43 }
 0x1ae   : > { %752 = vmatpush.msrb.mxu0 %v713_v0  ;;  %790 = vmatpush.msrb.mxu2 %v721_v25 }
 0x1af   : > { %772 = vmatpush.msrb.mxu1 %v714_v7  ;;  %873 = vmatpush.msrb.mxu3 %v863_v45  ;;  %v854_v7 = vld [vmem:[#allocation18 + $0x10] sm:$0xff] }
 0x1b0   : > { %753 = vmatpush.msrb.mxu0 %v710_v4  ;;  %791 = vmatpush.msrb.mxu2 %v718_v27 }
 0x1b1   : > { %773 = vmatpush.msrb.mxu1 %v711_v9  ;;  %874 = vmatpush.msrb.mxu3 %v862_v49  ;;  %v853_v9 = vld [vmem:[#allocation18 + $0x8] sm:$0xff]  ;;  %v868_v49 = vld [vmem:[%s1570_s13] sm:$0x1] }
 0x1b2   : > { %754 = vmatpush.msrb.mxu0 %v707_v6  ;;  %792 = vmatpush.msrb.mxu2 %v715_v29 }
 0x1b3   : > { %774 = vmatpush.msrb.mxu1 %v708_v11  ;;  %875 = vmatpush.msrb.mxu3 %v861_v52 }
 0x1b4   : > { %755 = vmatpush.msrb.mxu0 %v704_v8  ;;  %793 = vmatpush.msrb.mxu2 %v712_v30 }
 0x1b5   : > { %775 = vmatpush.msrb.mxu1 %v705_v16  ;;  %876 = vmatpush.msrb.mxu3 %v860_v54  ;;  %v1359_v54 = vmov 0.0  }
 0x1b6   : > { %756 = vmatpush.msrb.mxu0 %v701_v10  ;;  %794 = vmatpush.msrb.mxu2 %v709_v31 }
 0x1b7   : > { %776 = vmatpush.msrb.mxu1 %v702_v20  ;;  %877 = vmatpush.msrb.mxu3 %v859_v56 }
 0x1b8   : > { %757 = vmatpush.msrb.mxu0 %v698_v12  ;;  %795 = vmatpush.msrb.mxu2 %v706_v32  ;;  %v852_v12 = vld [vmem:[#allocation18] sm:$0xff] }
 0x1b9   : > { %777 = vmatpush.msrb.mxu1 %v699_v22  ;;  %878 = vmatpush.msrb.mxu3 %v858_v58 }
 0x1ba   : > { %758 = vmatpush.msrb.mxu0 %v695_v13  ;;  %796 = vmatpush.msrb.mxu2 %v703_v33 }
 0x1bb   : > { %778 = vmatpush.msrb.mxu1 %v696_v24  ;;  %879 = vmatpush.msrb.mxu3 %v857_v62  ;;  %v625_v24 = vperm.slane %v1535_v46, 2 }
 0x1bc   : > { %759 = vmatpush.msrb.mxu0 %v692_v15  ;;  %797 = vmatpush.msrb.mxu2 %v700_v34 }
 0x1bd   : > { %779 = vmatpush.msrb.mxu1 %v693_v26  ;;  %880 = vmatpush.msrb.mxu3 %v856_v63 }
 0x1be   : > { %760 = vmatpush.msrb.mxu0 %v689_v19  ;;  %798 = vmatpush.msrb.mxu2 %v697_v35 }
 0x1bf   : > { %761 = vmatmul.f32.vlgmr.msrb.gmra.mxu0 %v1337_v48  ;;  %780 = vmatpush.msrb.mxu1 %v690_v28 }
 0x1c0   : > { %799 = vmatpush.msrb.mxu2 %v694_v36  ;;  %881 = vmatpush.msrb.mxu3 %v855_v3 }
 0x1c2   : > { %800 = vmatpush.msrb.mxu2 %v691_v37  ;;  %882 = vmatpush.msrb.mxu3 %v854_v7 }
 0x1c4   : > { %883 = vmatpush.msrb.mxu3 %v853_v9 }
 0x1c6   : > { %884 = vmatpush.msrb.mxu3 %v852_v12 }
 0x21c   : > { %v569_v38 = vpop.f32.mrf.mxu0 }
 0x21d   : > { %v572_v39 = vmax.f32 %v569_v38, 0.0 }
 0x21f   : > { %645 = vmatmul.f32.vlgmr.msra.gmra.mxu1 %v572_v39  ;;  %665 = vmatmul.f32.vlgmr.msra.gmra.mxu2 %v572_v39 }
 0x220   : > { %685 = vmatmul.f32.vlgmr.msra.gmra.mxu3 %v572_v39 }
 0x227   : > { %781 = vmatmul.f32.vlgmr.msrb.gmra.mxu1 %v1337_v48  ;;  %801 = vmatmul.f32.vlgmr.msrb.gmra.mxu2 %v1337_v48 }
 0x23c   : > { %v762_v2 = vpop.f32.mrf.mxu0 }
 0x23d   : > { %v763_v53 = vadd.f32 %v762_v2, %v739_v47 }
 0x29c   : > { %v646_v50 = vpop.f32.mrf.mxu1 }
 0x29d   : > { %v647_v55 = vadd.f32 %v646_v50, %v623_v51 }
 0x29f   : > { %v805_v57 = vadd.f32 %v763_v53, %v647_v55  ;;  %v906_v53 = vstv %s905_s6 }
 0x2a0   : > { %vm907_vm3 = vcmp.eq.s32.totalorder %v1480_v1, %v906_v53 }
 0x2a1   : > { %v960_v59 = vmul.f32 -1.442695, %v805_v57  ;;  %v962_v50 = vsel %vm907_vm3, 1.0, %v1359_v54  }
 0x2a2   : > { %v666_v0 = vpop.f32.mrf.mxu2 }
 0x2a3   : > { %1033 = vpow2.f32 %v960_v59  ;;  %v667_v5 = vadd.f32 %v666_v0, %v624_v60  ;;  %v686_v28 = vpop.f32.mrf.mxu3 }
 0x2a4   : > { %v782_v4 = vpop.f32.mrf.mxu1  ;;  %v687_v33 = vadd.f32 %v686_v28, %v625_v24 }
 0x2a5   : > { %v783_v6 = vadd.f32 %v782_v4, %v740_v61 }
 0x2a7   : > { %v825_v8 = vadd.f32 %v783_v6, %v667_v5 }
 0x2a9   : > { %v1034_v10 = vpop.eup %1033  ;;  %v961_v11 = vmul.f32 -1.442695, %v825_v8 }
 0x2aa   : > { %v809_v13 = vadd.f32 1.0, %v1034_v10  ;;  %v802_v20 = vpop.f32.mrf.mxu2 }
 0x2ab   : > { %1035 = vpow2.f32 %v961_v11  ;;  %v803_v25 = vadd.f32 %v802_v20, %v741_v18 }
 0x2ac   : > { %1037 = vrcp.f32 %v809_v13  ;;  %v821_v21 = vand.u32 2147483648, %v809_v13  ;;  %v819_v23 = vand.u32 2147483647, %v809_v13  ;;  %vm815_vm11 = vweird.f32 %v809_v13 }
 0x2ae   : > { %v822_v29 = vor.u32 1.1754944e-38, %v821_v21  ;;  %vm820_vm13 = vcmp.eq.f32.partialorder %v819_v23, 8.507059e+37 }
 0x2b1   : > { %v1036_v14 = vpop.eup %1035 }
 0x2b2   : > { %v1038_v15 = vpop.eup %1037  ;;  %v829_v16 = vadd.f32 1.0, %v1036_v14 }
 0x2b3   : > { %v811_v17 = vmul.f32 %v1038_v15, %v809_v13  ;;  %vm816_vm10 = vweird.f32 %v1038_v15 }
 0x2b4   : > { %1039 = vrcp.f32 %v829_v16  ;;  %vm817_vm12 = vmor %vm815_vm11, %vm816_vm10  ;;  %v841_v36 = vand.u32 2147483648, %v829_v16  ;;  %v839_v39 = vand.u32 2147483647, %v829_v16  ;;  %vm835_vm15 = vweird.f32 %v829_v16 }
 0x2b5   : > { %v812_v19 = vsub.f32 1.0, %v811_v17 }
 0x2b6   : > { %v842_v41 = vor.u32 1.1754944e-38, %v841_v36  ;;  %vm840_vm1 = vcmp.eq.f32.partialorder %v839_v39, 8.507059e+37 }
 0x2b7   : > { %v813_v22 = vmul.f32 %v1038_v15, %v812_v19 }
 0x2b9   : > { %v814_v26 = vadd.f32 %v1038_v15, %v813_v22 }
 0x2ba   : > { %v1040_v27 = vpop.eup %1039 }
 0x2bb   : > { %v831_v30 = vmul.f32 %v1040_v27, %v829_v16  ;;  %v818_v31 = vsel %vm817_vm12, %v1038_v15, %v814_v26  ;;  %vm836_vm14 = vweird.f32 %v1040_v27 }
 0x2bc   : > { %v823_v32 = vsel %vm820_vm13, %v822_v29, %v818_v31  ;;  %vm837_vm0 = vmor %vm835_vm15, %vm836_vm14 }
 0x2bd   : > { %v845_v34 = vmul.f32 %v823_v32, %v803_v25  ;;  %v832_v35 = vsub.f32 1.0, %v831_v30 }
 0x2bf   : > { %v846_v37 = vadd.f32 %v845_v34, %v687_v33  ;;  %v833_v38 = vmul.f32 %v1040_v27, %v832_v35 }
 0x2c1   : > { %1041 = vtanh.f32 %v846_v37  ;;  %v834_v40 = vadd.f32 %v1040_v27, %v833_v38 }
 0x2c3   : > { %v838_v42 = vsel %vm837_vm0, %v1040_v27, %v834_v40 }
 0x2c4   : > { %v843_v43 = vsel %vm840_vm1, %v842_v41, %v838_v42 }
 0x2c5   : > { %v848_v44 = vsub.f32 1.0, %v843_v43  ;;  %v850_v47 = vmul.f32 %v1337_v48, %v843_v43 }
 0x2c7   : > { %v1042_v45 = vpop.eup %1041 }
 0x2c8   : > { %v849_v46 = vmul.f32 %v1042_v45, %v848_v44 }
 0x2ca   : > { %v851_v48 = vadd.f32 %v850_v47, %v849_v46  }
 0x2cc   : > { %885 = vmatmul.f32.vlgmr.msrb.gmra.mxu3 %v851_v48 }
 0x34f   : > { %v886_v2 = vpop.f32.mrf.mxu3 }
 0x350   : > { %v887_v51 = vadd.f32 %v886_v2, %v868_v49 }
 0x352   : > { %v890_v52 = vsel %vm889_vm2, %v887_v51, -inf }
 0x353   : > { %891 = vmax.xlane.f32.xlu0 %v890_v52 }
 0x3c6   : > { %v892_v55 = vpop.xlane.xlu0 %891 }
 0x3c7   : > { %v893_v56 = vsub.f32 %v887_v51, %v892_v55 }
 0x3c9   : > { %v894_v57 = vmul.f32 1.442695, %v893_v56 }
 0x3cb   : > { %1043 = vpow2.f32 %v894_v57 }
 0x3d1   : > { %v1044_v58 = vpop.eup %1043 }
 0x3d2   : > { %v896_v59 = vsel %vm889_vm2, %v1044_v58, 0.0 }
 0x3d3   : > { %897 = vadd.xlane.f32.xlu0 %v896_v59 }
 0x446   : > { %v898_v60 = vpop.xlane.xlu0 %897 }
 0x447   : > { %1045 = vlog2.f32 %v898_v60 }
 0x44d   : > { %v1046_v61 = vpop.eup %1045 }
 0x44e   : > { %v900_v62 = vmul.f32 0.6931472, %v1046_v61 }
 0x450   : > { %v901_v63 = vadd.f32 %v900_v62, %v892_v55  ;;  %532 = sbr.rel (!%p530_p1) target bundleno = 383 (0x17f), region = 142 }
 0x452   : > { %v902_v0 = vsub.f32 %v887_v51, %v901_v63 }
 0x454   : > { %904 = vst [vmem:[%s903_s29] sm:$0x1] %v902_v0 }
 0x455   :  { %922 = dma.vmem_to_hbm [thread:$0]  %s915_s17, 128, %s917_s15, [#allocation4], %s1361_s8, %s1361_s8, %s1362_s18  }
 0x456   :  { %1321 = dma.done.wait [#allocation4], 128  }
 0x457   :  { %1322 = vsyncadd [#allocation4], 4294967168 }
 0x458   :  { %927 = vsyncpa [#allocation3], 1 }
 0x459   :  { %928 = vsyncpa [#allocation10], 1 }
 0x45a   :  { %929 = vsyncpa [#allocation13], 1 }
 0x45b   :  { %930 = vsyncpa [#allocation16], 1 }
 0x45c   :  { %931 = vsyncpa [#allocation19], 1 }
 0x45d   :  { %932 = vsyncpa [#allocation4], 1 }
 0x45e   :  { %933 = vsyncpa [#allocation5], 1 }
 0x45f   :  { %934 = vsyncpa [#allocation7], 1 }

</bundles_post_ra>
